<compile_context>
chip_gen: v5e
topology: v5e:2x2
jax: 0.10.0
libtpu: 0.0.40
codegen_flags: <defaults>
</compile_context>

<pallas_src>
import math

import jax
import jax.numpy as jnp
from jax import lax
from jax.experimental import pallas as pl
from jax.experimental.pallas import tpu as pltpu

# ----------------------------- configuration --------------------------------
N = 2           # batch
C = 32          # embed_dim
H = W = 8       # spatial -> feature_num = H * W
L = H * W       # number of spatial tokens (before the mean token)
NUM_HEADS = 4
HEAD_DIM = C // NUM_HEADS
OUT_DIM = 16    # output_dim of c_proj
PAD = 128       # lane-tile width each q/k/v block of the fused weight is padded to


# ------------------------------- kernel --------------------------------------
def attention_pool_kernel(
    x_ref,      # (N, C, L)     raw activations (free reshape of NCHW)
    eye_ref,    # (L, L)        identity: on-chip (C,L)->(L,C) transpose via MXU
    wqkv_ref,   # (C, 3*PAD)    [wq.T*scale |0| wk.T |0| wv.T |0]
    p0c_ref,    # (3, C)        rows: pos0-projected q/k/v constants (bias folded)
    prck_ref,   # (L, C)        posr @ wk.T + bk
    prcv_ref,   # (L, C)        posr @ wv.T + bv
    hb_ref,     # (C, C)        block-diagonal head-broadcast matrix (ones(8,8) blocks)
    wc_ref,     # (C, OUT_DIM)  c_proj.weight.T
    bc_ref,     # (1, OUT_DIM)
    o_ref,      # (N, OUT_DIM)
):
    f32 = jnp.float32
    n_b, c_dim, l_tok = x_ref.shape
    pad_w = wqkv_ref.shape[1] // 3

    x = x_ref[...]                                                 # (N, C, L)
    eye_l = eye_ref[...]                                           # (L, L)

    # (C, L) -> (L, C) per batch via identity matmul (standard rhs-contraction
    # MXU pattern), then ONE fused (N*L, C) @ (C, 3*PAD) projection matmul.
    xt = jnp.concatenate(
        [lax.dot_general(eye_l, x[i], (((1,), (1,)), ((), ())),
                         preferred_element_type=f32) for i in range(n_b)],
        axis=0)                                                    # (N*L, C)
    xproj = jnp.dot(xt, wqkv_ref[...], preferred_element_type=f32)  # (N*L, 3*PAD)
    xproj = xproj.reshape(n_b, l_tok, 3 * pad_w)                   # (N, L, 3*PAD)

    # lane-tile-aligned q/k/v slices (offsets 0 / 128 / 256)
    xq = xproj[..., 0:c_dim]                                       # (N, L, C)  x@wq.T*scale
    xk = xproj[..., pad_w:pad_w + c_dim]                           # (N, L, C)  x@wk.T
    xv = xproj[..., 2 * pad_w:2 * pad_w + c_dim]                   # (N, L, C)  x@wv.T

    # mean-token projections via linearity: proj(mean(x)+pos0) = mean(proj(x)) + const
    q = jnp.mean(xq, axis=1) + p0c_ref[0:1]                        # (N, C)  pre-scaled query
    k0 = jnp.mean(xk, axis=1) + p0c_ref[1:2]                       # (N, C)
    v0 = jnp.mean(xv, axis=1) + p0c_ref[2:3]                       # (N, C)
    kr = xk + prck_ref[...][None]                                  # (N, L, C)
    vr = xv + prcv_ref[...][None]                                  # (N, L, C)

    # per-head scores broadcast to each head's channels by one block-diag matmul
    hb = hb_ref[...]
    s0 = jnp.dot(q * k0, hb, preferred_element_type=f32)           # (N, C)
    sr = jnp.dot((q[:, None, :] * kr).reshape(n_b * l_tok, c_dim), hb,
                 preferred_element_type=f32).reshape(n_b, l_tok, c_dim)  # (N, L, C)

    # softmax over the L+1 tokens, entirely in channel space
    m = jnp.maximum(jnp.max(sr, axis=1), s0)                       # (N, C)
    e0 = jnp.exp(s0 - m)                                           # (N, C)
    er = jnp.exp(sr - m[:, None, :])                               # (N, L, C)
    denom = e0 + jnp.sum(er, axis=1)                               # (N, C)
    num = e0 * v0 + jnp.sum(er * vr, axis=1)                       # (N, C)

    # EUP approx reciprocal + one Newton step keeps ~f32 accuracy
    r = pl.reciprocal(denom, approx=True)
    r = r * (2.0 - denom * r)
    attn = num * r                                                 # (N, C)

    out = jnp.dot(attn, wc_ref[...], preferred_element_type=f32) + bc_ref[...]
    o_ref[...] = out.astype(o_ref.dtype)


# --------------------------- one-time param prep ------------------------------
def prepare_params(params):
    """Hoist all transposes / fusions / foldable constants out of the call path."""
    f32 = jnp.float32
    scale = HEAD_DIM ** -0.5
    wq_t = params["wq"].T * scale            # (C, C)  softmax scale folded into q path
    wk_t = params["wk"].T
    wv_t = params["wv"].T
    bq = params["bq"] * scale
    bk = params["bk"]
    bv = params["bv"]

    pad = ((0, 0), (0, PAD - C))
    wqkv = jnp.concatenate(
        [jnp.pad(wq_t, pad), jnp.pad(wk_t, pad), jnp.pad(wv_t, pad)],
        axis=1)                                                    # (C, 3*PAD)

    pos0 = params["pos"][:1]                 # (1, C)  mean-token positional embedding
    posr = params["pos"][1:]                 # (L, C)  spatial-token positional embeddings
    p0c = jnp.concatenate([pos0 @ wq_t + bq[None],
                           pos0 @ wk_t + bk[None],
                           pos0 @ wv_t + bv[None]], axis=0)        # (3, C)
    prck = posr @ wk_t + bk[None]            # (L, C)
    prcv = posr @ wv_t + bv[None]            # (L, C)

    head = jnp.arange(C, dtype=jnp.int32) // HEAD_DIM
    hbcast = (head[:, None] == head[None, :]).astype(f32)          # (C, C) block-diag ones

    return {
        "eye_l": jnp.eye(L, dtype=f32),
        "wqkv": wqkv.astype(f32),
        "p0c": p0c.astype(f32),
        "prck": prck.astype(f32),
        "prcv": prcv.astype(f32),
        "hbcast": hbcast,
        "wc_t": params["wc"].T.astype(f32),  # (C, OUT_DIM)
        "bc": params["bc"][None, :].astype(f32),
    }


# ------------------------------- wrapper --------------------------------------
@jax.jit
def attention_pool(x_nchw, prep):
    n, c, h, w = x_nchw.shape
    l = h * w
    x_ncl = x_nchw.reshape(n, c, l)          # free reshape; transpose happens in-kernel

    def full(shape):
        return pl.BlockSpec(shape, lambda i, _nd=len(shape): (0,) * _nd)

    out = pl.pallas_call(
        attention_pool_kernel,
        out_shape=jax.ShapeDtypeStruct((n, OUT_DIM), jnp.float32),
        grid=(1,),                           # single step: whole (tiny) batch at once
        in_specs=[
            full((n, c, l)),                 # x
            full((l, l)),                    # eye_l
            full((c, 3 * PAD)),              # wqkv (padded blocks)
            full((3, c)),                    # p0c
            full((l, c)), full((l, c)),      # prck, prcv
            full((c, c)),                    # hbcast
            full((c, OUT_DIM)), full((1, OUT_DIM)),  # wc, bc
        ],
        out_specs=full((n, OUT_DIM)),
        compiler_params=pltpu.CompilerParams(
            dimension_semantics=("arbitrary",)),
    )(x_ncl, prep["eye_l"], prep["wqkv"], prep["p0c"], prep["prck"],
      prep["prcv"], prep["hbcast"], prep["wc_t"], prep["bc"])

    return out                               # (N, OUT_DIM)


# --------------------------- pure-JAX reference --------------------------------
def attention_pool_ref(x_nchw, params):
    n, c, h, w = x_nchw.shape
    l = h * w
    xs = x_nchw.reshape(n, c, l).transpose(2, 0, 1)                   # (L, N, C)
    xs = jnp.concatenate([xs.mean(axis=0, keepdims=True), xs], 0)     # (L+1, N, C)
    xs = xs + params["pos"][:, None, :]

    q_in = xs[:1]                                                     # (1, N, C)
    q = q_in @ params["wq"].T + params["bq"]
    k = xs @ params["wk"].T + params["bk"]
    v = xs @ params["wv"].T + params["bv"]

    hd = c // NUM_HEADS

    def split(t):
        s = t.shape[0]
        return t.reshape(s, n, NUM_HEADS, hd).transpose(1, 2, 0, 3)   # (N, H, S, hd)

    qh = split(q) * (hd ** -0.5)
    kh, vh = split(k), split(v)
    attn = jax.nn.softmax(jnp.einsum("nhqd,nhkd->nhqk", qh, kh), axis=-1)
    oh = jnp.einsum("nhqk,nhkd->nhqd", attn, vh)                      # (N, H, 1, hd)
    o = oh.transpose(2, 0, 1, 3).reshape(1, n, c)
    out = o @ params["wc"].T + params["bc"]
    return out[0]                                                     # (N, OUT_DIM)


# --------------------------------- main ----------------------------------------
if __name__ == "__main__":
    key = jax.random.PRNGKey(0)
    keys = jax.random.split(key, 10)

    params = {
        # positional_embedding = randn(feature_num + 1, embed_dim) / sqrt(embed_dim)
        "pos": jax.random.normal(keys[0], (L + 1, C), jnp.float32) / math.sqrt(C),
        "wq": jax.random.normal(keys[1], (C, C), jnp.float32) * (1.0 / math.sqrt(C)),
        "bq": jax.random.normal(keys[2], (C,), jnp.float32) * 0.02,
        "wk": jax.random.normal(keys[3], (C, C), jnp.float32) * (1.0 / math.sqrt(C)),
        "bk": jax.random.normal(keys[4], (C,), jnp.float32) * 0.02,
        "wv": jax.random.normal(keys[5], (C, C), jnp.float32) * (1.0 / math.sqrt(C)),
        "bv": jax.random.normal(keys[6], (C,), jnp.float32) * 0.02,
        "wc": jax.random.normal(keys[7], (OUT_DIM, C), jnp.float32) * (1.0 / math.sqrt(C)),
        "bc": jax.random.normal(keys[8], (OUT_DIM,), jnp.float32) * 0.02,
    }

    x = jax.random.normal(keys[9], (N, C, H, W), jnp.float32)

    prep = prepare_params(params)          # one-time layout / fusion prep (hoisted)
    out = attention_pool(x, prep)
    out = jax.block_until_ready(out)

    ref = attention_pool_ref(x, params)
    assert out.shape == (N, OUT_DIM), out.shape
    assert jnp.allclose(out, ref, atol=1e-4, rtol=1e-4), (
        float(jnp.max(jnp.abs(out - ref))))

    print("KERNEL_OK")
</pallas_src>

<mosaic_0001>
module attributes {stable_mosaic.version = 11 : i64} {
  func.func @attention_pool_kernel(%arg0: i32, %arg1: memref<2x32x64xf32, #tpu.memory_space<vmem>>, %arg2: memref<64x64xf32, #tpu.memory_space<vmem>>, %arg3: memref<32x384xf32, #tpu.memory_space<vmem>>, %arg4: memref<3x32xf32, #tpu.memory_space<vmem>>, %arg5: memref<64x32xf32, #tpu.memory_space<vmem>>, %arg6: memref<64x32xf32, #tpu.memory_space<vmem>>, %arg7: memref<32x32xf32, #tpu.memory_space<vmem>>, %arg8: memref<32x16xf32, #tpu.memory_space<vmem>>, %arg9: memref<1x16xf32, #tpu.memory_space<vmem>>, %arg10: memref<2x16xf32, #tpu.memory_space<vmem>>) attributes {dimension_semantics = [#tpu.dimension_semantics<arbitrary>], iteration_bounds = array<i64: 1>, scalar_prefetch = 0 : i64, scratch_operands = 0 : i64, tpu.core_type = #tpu.core_type<tc>, window_params = [{pipeline_mode = #tpu.pipeline_mode<synchronous>, transform_indices = @transform_0, window_bounds = array<i64: 2, 32, 64>}, {pipeline_mode = #tpu.pipeline_mode<synchronous>, transform_indices = @transform_1, window_bounds = array<i64: 64, 64>}, {pipeline_mode = #tpu.pipeline_mode<synchronous>, transform_indices = @transform_2, window_bounds = array<i64: 32, 384>}, {pipeline_mode = #tpu.pipeline_mode<synchronous>, transform_indices = @transform_3, window_bounds = array<i64: 3, 32>}, {pipeline_mode = #tpu.pipeline_mode<synchronous>, transform_indices = @transform_4, window_bounds = array<i64: 64, 32>}, {pipeline_mode = #tpu.pipeline_mode<synchronous>, transform_indices = @transform_5, window_bounds = array<i64: 64, 32>}, {pipeline_mode = #tpu.pipeline_mode<synchronous>, transform_indices = @transform_6, window_bounds = array<i64: 32, 32>}, {pipeline_mode = #tpu.pipeline_mode<synchronous>, transform_indices = @transform_7, window_bounds = array<i64: 32, 16>}, {pipeline_mode = #tpu.pipeline_mode<synchronous>, transform_indices = @transform_8, window_bounds = array<i64: 1, 16>}, {pipeline_mode = #tpu.pipeline_mode<synchronous>, transform_indices = @transform_9, window_bounds = array<i64: 2, 16>}]} {
    %c0 = arith.constant 0 : index
    %c0_0 = arith.constant 0 : index
    %c0_1 = arith.constant 0 : index
    %0 = vector.load %arg1[%c0, %c0_0, %c0_1] : memref<2x32x64xf32, #tpu.memory_space<vmem>>, vector<2x32x64xf32>
    %c0_2 = arith.constant 0 : index
    %c0_3 = arith.constant 0 : index
    %1 = vector.load %arg2[%c0_2, %c0_3] : memref<64x64xf32, #tpu.memory_space<vmem>>, vector<64x64xf32>
    %2 = vector.extract_strided_slice %0 {offsets = [0, 0, 0], sizes = [1, 32, 64], strides = [1, 1, 1]} : vector<2x32x64xf32> to vector<1x32x64xf32>
    %3 = vector.shape_cast %2 : vector<1x32x64xf32> to vector<32x64xf32>
    %cst = arith.constant dense<0.000000e+00> : vector<64x32xf32>
    %4 = tpu.matmul %1, %3, %cst {dimension_numbers = #tpu.dot_dimension_numbers<[1], [1], [0], [0], [0, 0, 1, 0], [], []>} : vector<64x64xf32>, vector<32x64xf32>, vector<64x32xf32> -> vector<64x32xf32>
    %5 = vector.extract_strided_slice %0 {offsets = [1, 0, 0], sizes = [1, 32, 64], strides = [1, 1, 1]} : vector<2x32x64xf32> to vector<1x32x64xf32>
    %6 = vector.shape_cast %5 : vector<1x32x64xf32> to vector<32x64xf32>
    %cst_4 = arith.constant dense<0.000000e+00> : vector<64x32xf32>
    %7 = tpu.matmul %1, %6, %cst_4 {dimension_numbers = #tpu.dot_dimension_numbers<[1], [1], [0], [0], [0, 0, 1, 0], [], []>} : vector<64x64xf32>, vector<32x64xf32>, vector<64x32xf32> -> vector<64x32xf32>
    %8 = tpu.concatenate %4, %7 in 0 : vector<64x32xf32>, vector<64x32xf32> -> vector<128x32xf32>
    %c0_5 = arith.constant 0 : index
    %c0_6 = arith.constant 0 : index
    %9 = vector.load %arg3[%c0_5, %c0_6] : memref<32x384xf32, #tpu.memory_space<vmem>>, vector<32x384xf32>
    %cst_7 = arith.constant dense<0.000000e+00> : vector<128x384xf32>
    %10 = tpu.matmul %8, %9, %cst_7 {dimension_numbers = #tpu.dot_dimension_numbers<[1], [0], [0], [1], [0, 0, 1, 1], [], []>} : vector<128x32xf32>, vector<32x384xf32>, vector<128x384xf32> -> vector<128x384xf32>
    %11 = vector.shape_cast %10 : vector<128x384xf32> to vector<2x64x384xf32>
    %12 = vector.extract_strided_slice %11 {offsets = [0, 0, 0], sizes = [2, 64, 32], strides = [1, 1, 1]} : vector<2x64x384xf32> to vector<2x64x32xf32>
    %13 = vector.extract_strided_slice %11 {offsets = [0, 0, 128], sizes = [2, 64, 32], strides = [1, 1, 1]} : vector<2x64x384xf32> to vector<2x64x32xf32>
    %14 = vector.extract_strided_slice %11 {offsets = [0, 0, 256], sizes = [2, 64, 32], strides = [1, 1, 1]} : vector<2x64x384xf32> to vector<2x64x32xf32>
    %cst_8 = arith.constant dense<0.000000e+00> : vector<2x32xf32>
    %15 = vector.multi_reduction <add>, %12, %cst_8 [1] : vector<2x64x32xf32> to vector<2x32xf32>
    %cst_9 = arith.constant 6.400000e+01 : f32
    %16 = vector.broadcast %cst_9 : f32 to vector<2x32xf32>
    %17 = arith.divf %15, %16 : vector<2x32xf32>
    %c0_10 = arith.constant 0 : index
    %c0_11 = arith.constant 0 : index
    %18 = vector.load %arg4[%c0_10, %c0_11] : memref<3x32xf32, #tpu.memory_space<vmem>>, vector<1x32xf32>
    %19 = vector.broadcast %18 : vector<1x32xf32> to vector<2x32xf32>
    %20 = arith.addf %17, %19 : vector<2x32xf32>
    %cst_12 = arith.constant dense<0.000000e+00> : vector<2x32xf32>
    %21 = vector.multi_reduction <add>, %13, %cst_12 [1] : vector<2x64x32xf32> to vector<2x32xf32>
    %cst_13 = arith.constant 6.400000e+01 : f32
    %22 = vector.broadcast %cst_13 : f32 to vector<2x32xf32>
    %23 = arith.divf %21, %22 : vector<2x32xf32>
    %c1 = arith.constant 1 : index
    %c0_14 = arith.constant 0 : index
    %24 = vector.load %arg4[%c1, %c0_14] : memref<3x32xf32, #tpu.memory_space<vmem>>, vector<1x32xf32>
    %25 = vector.broadcast %24 : vector<1x32xf32> to vector<2x32xf32>
    %26 = arith.addf %23, %25 : vector<2x32xf32>
    %cst_15 = arith.constant dense<0.000000e+00> : vector<2x32xf32>
    %27 = vector.multi_reduction <add>, %14, %cst_15 [1] : vector<2x64x32xf32> to vector<2x32xf32>
    %cst_16 = arith.constant 6.400000e+01 : f32
    %28 = vector.broadcast %cst_16 : f32 to vector<2x32xf32>
    %29 = arith.divf %27, %28 : vector<2x32xf32>
    %c2 = arith.constant 2 : index
    %c0_17 = arith.constant 0 : index
    %30 = vector.load %arg4[%c2, %c0_17] : memref<3x32xf32, #tpu.memory_space<vmem>>, vector<1x32xf32>
    %31 = vector.broadcast %30 : vector<1x32xf32> to vector<2x32xf32>
    %32 = arith.addf %29, %31 : vector<2x32xf32>
    %c0_18 = arith.constant 0 : index
    %c0_19 = arith.constant 0 : index
    %33 = vector.load %arg5[%c0_18, %c0_19] : memref<64x32xf32, #tpu.memory_space<vmem>>, vector<64x32xf32>
    %34 = vector.shape_cast %33 : vector<64x32xf32> to vector<1x64x32xf32>
    %35 = vector.broadcast %34 : vector<1x64x32xf32> to vector<2x64x32xf32>
    %36 = arith.addf %13, %35 : vector<2x64x32xf32>
    %c0_20 = arith.constant 0 : index
    %c0_21 = arith.constant 0 : index
    %37 = vector.load %arg6[%c0_20, %c0_21] : memref<64x32xf32, #tpu.memory_space<vmem>>, vector<64x32xf32>
    %38 = vector.shape_cast %37 : vector<64x32xf32> to vector<1x64x32xf32>
    %39 = vector.broadcast %38 : vector<1x64x32xf32> to vector<2x64x32xf32>
    %40 = arith.addf %14, %39 : vector<2x64x32xf32>
    %c0_22 = arith.constant 0 : index
    %c0_23 = arith.constant 0 : index
    %41 = vector.load %arg7[%c0_22, %c0_23] : memref<32x32xf32, #tpu.memory_space<vmem>>, vector<32x32xf32>
    %42 = arith.mulf %20, %26 : vector<2x32xf32>
    %cst_24 = arith.constant dense<0.000000e+00> : vector<2x32xf32>
    %43 = tpu.matmul %42, %41, %cst_24 {dimension_numbers = #tpu.dot_dimension_numbers<[1], [0], [0], [1], [0, 0, 1, 1], [], []>} : vector<2x32xf32>, vector<32x32xf32>, vector<2x32xf32> -> vector<2x32xf32>
    %44 = vector.shape_cast %20 : vector<2x32xf32> to vector<2x1x32xf32>
    %45 = vector.broadcast %44 : vector<2x1x32xf32> to vector<2x64x32xf32>
    %46 = arith.mulf %45, %36 : vector<2x64x32xf32>
    %47 = vector.shape_cast %46 : vector<2x64x32xf32> to vector<128x32xf32>
    %cst_25 = arith.constant dense<0.000000e+00> : vector<128x32xf32>
    %48 = tpu.matmul %47, %41, %cst_25 {dimension_numbers = #tpu.dot_dimension_numbers<[1], [0], [0], [1], [0, 0, 1, 1], [], []>} : vector<128x32xf32>, vector<32x32xf32>, vector<128x32xf32> -> vector<128x32xf32>
    %49 = vector.shape_cast %48 : vector<128x32xf32> to vector<2x64x32xf32>
    %cst_26 = arith.constant dense<0xFF800000> : vector<2x32xf32>
    %50 = vector.multi_reduction <maximumf>, %49, %cst_26 [1] : vector<2x64x32xf32> to vector<2x32xf32>
    %51 = arith.maximumf %50, %43 : vector<2x32xf32>
    %52 = arith.subf %43, %51 : vector<2x32xf32>
    %53 = math.exp %52 : vector<2x32xf32>
    %54 = vector.shape_cast %51 : vector<2x32xf32> to vector<2x1x32xf32>
    %55 = vector.broadcast %54 : vector<2x1x32xf32> to vector<2x64x32xf32>
    %56 = arith.subf %49, %55 : vector<2x64x32xf32>
    %57 = math.exp %56 : vector<2x64x32xf32>
    %cst_27 = arith.constant dense<0.000000e+00> : vector<2x32xf32>
    %58 = vector.multi_reduction <add>, %57, %cst_27 [1] : vector<2x64x32xf32> to vector<2x32xf32>
    %59 = arith.addf %53, %58 : vector<2x32xf32>
    %60 = arith.mulf %53, %32 : vector<2x32xf32>
    %61 = arith.mulf %57, %40 : vector<2x64x32xf32>
    %cst_28 = arith.constant dense<0.000000e+00> : vector<2x32xf32>
    %62 = vector.multi_reduction <add>, %61, %cst_28 [1] : vector<2x64x32xf32> to vector<2x32xf32>
    %63 = arith.addf %60, %62 : vector<2x32xf32>
    %64 = tpu.reciprocal %59 {approx = true} : vector<2x32xf32> -> vector<2x32xf32>
    %65 = arith.mulf %59, %64 : vector<2x32xf32>
    %cst_29 = arith.constant 2.000000e+00 : f32
    %66 = vector.broadcast %cst_29 : f32 to vector<2x32xf32>
    %67 = arith.subf %66, %65 : vector<2x32xf32>
    %68 = arith.mulf %64, %67 : vector<2x32xf32>
    %69 = arith.mulf %63, %68 : vector<2x32xf32>
    %c0_30 = arith.constant 0 : index
    %c0_31 = arith.constant 0 : index
    %70 = vector.load %arg8[%c0_30, %c0_31] : memref<32x16xf32, #tpu.memory_space<vmem>>, vector<32x16xf32>
    %cst_32 = arith.constant dense<0.000000e+00> : vector<2x16xf32>
    %71 = tpu.matmul %69, %70, %cst_32 {dimension_numbers = #tpu.dot_dimension_numbers<[1], [0], [0], [1], [0, 0, 1, 1], [], []>} : vector<2x32xf32>, vector<32x16xf32>, vector<2x16xf32> -> vector<2x16xf32>
    %c0_33 = arith.constant 0 : index
    %c0_34 = arith.constant 0 : index
    %72 = vector.load %arg9[%c0_33, %c0_34] : memref<1x16xf32, #tpu.memory_space<vmem>>, vector<1x16xf32>
    %73 = vector.broadcast %72 : vector<1x16xf32> to vector<2x16xf32>
    %74 = arith.addf %71, %73 : vector<2x16xf32>
    %c0_35 = arith.constant 0 : index
    %c0_36 = arith.constant 0 : index
    %75 = vector.load %arg10[%c0_35, %c0_36] : memref<2x16xf32, #tpu.memory_space<vmem>>, vector<2x16xf32>
    tpu.vector_store %arg10[%c0_35, %c0_36], %74 {strides = array<i32>} : memref<2x16xf32, #tpu.memory_space<vmem>>, vector<2x16xf32>,
    return
  }
  func.func @transform_0(%arg0: i32) -> (i32, i32, i32) {
    %c0_i32 = arith.constant 0 : i32
    %c0_i32_0 = arith.constant 0 : i32
    %c0_i32_1 = arith.constant 0 : i32
    %c0_i32_2 = arith.constant 0 : i32
    return %c0_i32, %c0_i32_0, %c0_i32_1 : i32, i32, i32
  }
  func.func @transform_1(%arg0: i32) -> (i32, i32) {
    %c0_i32 = arith.constant 0 : i32
    %c0_i32_0 = arith.constant 0 : i32
    %c0_i32_1 = arith.constant 0 : i32
    return %c0_i32, %c0_i32_0 : i32, i32
  }
  func.func @transform_2(%arg0: i32) -> (i32, i32) {
    %c0_i32 = arith.constant 0 : i32
    %c0_i32_0 = arith.constant 0 : i32
    %c0_i32_1 = arith.constant 0 : i32
    return %c0_i32, %c0_i32_0 : i32, i32
  }
  func.func @transform_3(%arg0: i32) -> (i32, i32) {
    %c0_i32 = arith.constant 0 : i32
    %c0_i32_0 = arith.constant 0 : i32
    %c0_i32_1 = arith.constant 0 : i32
    return %c0_i32, %c0_i32_0 : i32, i32
  }
  func.func @transform_4(%arg0: i32) -> (i32, i32) {
    %c0_i32 = arith.constant 0 : i32
    %c0_i32_0 = arith.constant 0 : i32
    %c0_i32_1 = arith.constant 0 : i32
    return %c0_i32, %c0_i32_0 : i32, i32
  }
  func.func @transform_5(%arg0: i32) -> (i32, i32) {
    %c0_i32 = arith.constant 0 : i32
    %c0_i32_0 = arith.constant 0 : i32
    %c0_i32_1 = arith.constant 0 : i32
    return %c0_i32, %c0_i32_0 : i32, i32
  }
  func.func @transform_6(%arg0: i32) -> (i32, i32) {
    %c0_i32 = arith.constant 0 : i32
    %c0_i32_0 = arith.constant 0 : i32
    %c0_i32_1 = arith.constant 0 : i32
    return %c0_i32, %c0_i32_0 : i32, i32
  }
  func.func @transform_7(%arg0: i32) -> (i32, i32) {
    %c0_i32 = arith.constant 0 : i32
    %c0_i32_0 = arith.constant 0 : i32
    %c0_i32_1 = arith.constant 0 : i32
    return %c0_i32, %c0_i32_0 : i32, i32
  }
  func.func @transform_8(%arg0: i32) -> (i32, i32) {
    %c0_i32 = arith.constant 0 : i32
    %c0_i32_0 = arith.constant 0 : i32
    %c0_i32_1 = arith.constant 0 : i32
    return %c0_i32, %c0_i32_0 : i32, i32
  }
  func.func @transform_9(%arg0: i32) -> (i32, i32) {
    %c0_i32 = arith.constant 0 : i32
    %c0_i32_0 = arith.constant 0 : i32
    %c0_i32_1 = arith.constant 0 : i32
    return %c0_i32, %c0_i32_0 : i32, i32
  }
}

</mosaic_0001>

<bundles_post_ra>
// kernel: attention_pool.1
= control target key start
LH: loop header
LB: loop body
LE: loop exit
PB: predicated region body
PF: predicated region fallthrough
CT: control target
= control target key end

     0   :  { %vm49_vm0 = vcmask 523264   ;;  %s1967_s0 = inlined_call_operand.vmem [shape: f32[2,32,64], index: 0, kind: input, shape index: {}]   ;;  %s1968_s1 = inlined_call_operand.vmem [shape: f32[64,64], index: 1, kind: input, shape index: {}]   ;;  %s1969_s2 = inlined_call_operand.vmem [shape: f32[32,384], index: 2, kind: input, shape index: {}]   ;;  %s1970_s3 = inlined_call_operand.vmem [shape: f32[3,32], index: 3, kind: input, shape index: {}]   ;;  %s1971_s4 = inlined_call_operand.vmem [shape: f32[64,32], index: 4, kind: input, shape index: {}]   ;;  %s1972_s5 = inlined_call_operand.vmem [shape: f32[64,32], index: 5, kind: input, shape index: {}]   ;;  %s1973_s6 = inlined_call_operand.vmem [shape: f32[32,32], index: 6, kind: input, shape index: {}]   ;;  %s1974_s7 = inlined_call_operand.vmem [shape: f32[32,16], index: 7, kind: input, shape index: {}]   ;;  %s1975_s8 = inlined_call_operand.vmem [shape: f32[1,16], index: 8, kind: input, shape index: {}]   ;;  %s1976_s9 = inlined_call_operand.hbm [shape: f32[2,16], index: 9, kind: output, shape index: {}]  }
   0x1   :  { %v36_v0 = vld [vmem:[%s1967_s0 + $0x18] sm:$0xff]  ;;  %v35_v1 = vld [vmem:[%s1967_s0 + $0x10] sm:$0xff] }
   0x2   :  { %1075 = vmatpush.xpose.msk.msra.mxu0 %vm49_vm0, %v36_v0 }
   0x3   :  { %14 = vsyncpa [#allocation3], 0  ;;  %v34_v2 = vld [vmem:[%s1967_s0 + $0x8] sm:$0xff]  ;;  %v33_v3 = vld [vmem:[%s1967_s0] sm:$0xff]  ;;  %vm192_vm1 = vcmask 261120   ;;  %vm644_vm3 = vcmask 1041409  }
   0x4   :  { %v41_v4 = vld [vmem:[%s1968_s1] sm:$0xff]  ;;  %v42_v5 = vld [vmem:[%s1968_s1 + $0x8] sm:$0xff]  ;;  %v43_v6 = vld [vmem:[%s1968_s1 + $0x10] sm:$0xff]  ;;  %s1244_s21 = smov [#allocation2]   ;;  %s1066_s24 = sshll.u32 %s1976_s9, 4  ;;  %vm1057_vm4 = vcmask 123904   ;;  %s1067_s24 = int_to_ptr.hbm [resolvable:$true] %s1066_s24 }
   0x5   :  { %v40_v7 = vld [vmem:[%s1967_s0 + $0x38] sm:$0xff]  ;;  %v39_v8 = vld [vmem:[%s1967_s0 + $0x30] sm:$0xff]  ;;  %v38_v10 = vld [vmem:[%s1967_s0 + $0x28] sm:$0xff] }
   0x6   :  { %1076 = vmatpush.xpose.msk.msra.mxu0 %vm49_vm0, %v35_v1  ;;  %1087 = vmatpush.xpose.msk.msra.mxu1 %vm49_vm0, %v40_v7  ;;  %v44_v9 = vld [vmem:[%s1968_s1 + $0x18] sm:$0xff]  ;;  %v37_v11 = vld [vmem:[%s1967_s0 + $0x20] sm:$0xff]  ;;  %v46_v13 = vld [vmem:[%s1968_s1 + $0x28] sm:$0xff] }
   0x7   :  { %v45_v12 = vld [vmem:[%s1968_s1 + $0x20] sm:$0xff]  ;;  %v47_v14 = vld [vmem:[%s1968_s1 + $0x30] sm:$0xff]  ;;  %v189_v15 = vld [vmem:[%s1969_s2 + $0x48] sm:$0xff] }
   0x8   :  { %v190_v16 = vld [vmem:[%s1969_s2 + $0x50] sm:$0xff]  ;;  %v191_v17 = vld [vmem:[%s1969_s2 + $0x58] sm:$0xff]  ;;  %253 = vmatpush.msra.mxu2 %v189_v15  ;;  %v188_v21 = vld [vmem:[%s1969_s2 + $0x40] sm:$0xff] }
   0x9   :  { %318 = vmatpush.msra.mxu3 %v190_v16  ;;  %v48_v18 = vld [vmem:[%s1968_s1 + $0x38] sm:$0xff]  ;;  %v186_v19 = vld [vmem:[%s1969_s2 + $0x30] sm:$0xff]  ;;  %v184_v23 = vld [vmem:[%s1969_s2 + $0x20] sm:$0xff] }
   0xa   :  { %1077 = vmatpush.xpose.msk.msra.mxu0 %vm49_vm0, %v34_v2  ;;  %1088 = vmatpush.xpose.msk.msra.mxu1 %vm49_vm0, %v39_v8  ;;  %v187_v20 = vld [vmem:[%s1969_s2 + $0x38] sm:$0xff]  ;;  %v185_v24 = vld [vmem:[%s1969_s2 + $0x28] sm:$0xff]  ;;  %v180_v25 = vld [vmem:[%s1969_s2] sm:$0xff] }
   0xb   :  { %254 = vmatpush.msra.mxu2 %v186_v19  ;;  %319 = vmatpush.msra.mxu3 %v187_v20  ;;  %v183_v22 = vld [vmem:[%s1969_s2 + $0x18] sm:$0xff]  ;;  %v181_v26 = vld [vmem:[%s1969_s2 + $0x8] sm:$0xff]  ;;  %v182_v27 = vld [vmem:[%s1969_s2 + $0x10] sm:$0xff] }
   0xd   :  { %255 = vmatpush.msra.mxu2 %v183_v22  ;;  %320 = vmatpush.msra.mxu3 %v184_v23 }
   0xe   :  { %1078 = vmatpush.xpose.msk.msra.mxu0 %vm49_vm0, %v33_v3  ;;  %1089 = vmatpush.xpose.msk.msra.mxu1 %vm49_vm0, %v38_v10 }
   0xf   :  { %256 = vmatpush.msra.mxu2 %v180_v25  ;;  %321 = vmatpush.msra.mxu3 %v181_v26  ;;  %v1243_v25 = vmov 64.0   ;;  %v1502_v26 = vld [vmem:[%s1973_s6 + $0x18] sm:$0xff] }
  0x10   :  { %1179 = vrcp.f32 %v1243_v25 }
  0x11   :  { %1079 = vmatmul.msk.f32.vlgmr.msra.gmra.mxu0 %vm49_vm0, %v41_v4  ;;  %1165 = vmatpush.msrb.mxu2 %v191_v17 }
  0x12   :  { %1090 = vmatpush.xpose.msk.msra.mxu1 %vm49_vm0, %v37_v11  ;;  %383 = vmatpush.msrb.mxu0 %v191_v17 }
  0x13   :  { %1166 = vmatpush.msrb.mxu2 %v188_v21  ;;  %1169 = vmatpush.msrb.mxu3 %v1502_v26 }
  0x14   :  { %384 = vmatpush.msrb.mxu0 %v188_v21 }
  0x15   :  { %1091 = vmatmul.msk.f32.vlgmr.msra.gmra.mxu1 %vm49_vm0, %v41_v4  ;;  %1167 = vmatpush.msrb.mxu2 %v185_v24 }
  0x16   :  { %385 = vmatpush.msrb.mxu0 %v185_v24  ;;  %660 = vmatpush.msrb.mxu1 %v1502_v26 }
  0x17   :  { %1168 = vmatpush.msrb.mxu2 %v182_v27 }
  0x18   :  { %386 = vmatpush.msrb.mxu0 %v182_v27 }
  0x19   :  { %1080 = vmatmul.msk.f32.gmra.mxu0 %vm49_vm0, %v42_v5 }
  0x1d   :  { %1092 = vmatmul.msk.f32.gmra.mxu1 %vm49_vm0, %v42_v5 }
  0x21   :  { %1081 = vmatmul.msk.f32.gmra.mxu0 %vm49_vm0, %v43_v6 }
  0x25   :  { %1093 = vmatmul.msk.f32.gmra.mxu1 %vm49_vm0, %v43_v6 }
  0x29   :  { %1082 = vmatmul.msk.f32.gmra.mxu0 %vm49_vm0, %v44_v9 }
  0x2d   :  { %1094 = vmatmul.msk.f32.gmra.mxu1 %vm49_vm0, %v44_v9 }
  0x31   :  { %1083 = vmatmul.msk.f32.gmra.mxu0 %vm49_vm0, %v45_v12 }
  0x35   :  { %1095 = vmatmul.msk.f32.gmra.mxu1 %vm49_vm0, %v45_v12 }
  0x39   :  { %1084 = vmatmul.msk.f32.gmra.mxu0 %vm49_vm0, %v46_v13 }
  0x3d   :  { %1096 = vmatmul.msk.f32.gmra.mxu1 %vm49_vm0, %v46_v13 }
  0x41   :  { %1085 = vmatmul.msk.f32.gmra.mxu0 %vm49_vm0, %v47_v14 }
  0x45   :  { %1097 = vmatmul.msk.f32.gmra.mxu1 %vm49_vm0, %v47_v14 }
  0x49   :  { %1086 = vmatmul.msk.f32.gmra.mxu0 %vm49_vm0, %v48_v18 }
  0x4d   :  { %1098 = vmatmul.msk.f32.gmra.mxu1 %vm49_vm0, %v48_v18 }
  0x8e   :  { %v103_v28 = vpop.f32.mrf.mxu0 }
  0x8f   :  { %1099 = vmatmul.msk.f32.vlgmr.msra.gmra.mxu2 %vm192_vm1, %v103_v28  ;;  %1115 = vmatmul.msk.f32.vlgmr.msra.gmra.mxu3 %vm192_vm1, %v103_v28 }
  0x90   :  { %1131 = vmatmul.msk.f32.vlgmr.msrb.gmra.mxu0 %vm192_vm1, %v103_v28 }
  0x92   :  { %v156_v35 = vpop.f32.mrf.mxu1 }
  0x96   :  { %v106_v29 = vpop.f32.mrf.mxu0 }
  0x97   :  { %1100 = vmatmul.msk.f32.gmra.mxu2 %vm192_vm1, %v106_v29  ;;  %1116 = vmatmul.msk.f32.gmra.mxu3 %vm192_vm1, %v106_v29 }
  0x98   :  { %1132 = vmatmul.msk.f32.gmra.mxu0 %vm192_vm1, %v106_v29 }
  0x9a   :  { %v159_v37 = vpop.f32.mrf.mxu1 }
  0x9e   :  { %v109_v30 = vpop.f32.mrf.mxu0 }
  0x9f   :  { %1101 = vmatmul.msk.f32.gmra.mxu2 %vm192_vm1, %v109_v30  ;;  %1117 = vmatmul.msk.f32.gmra.mxu3 %vm192_vm1, %v109_v30 }
  0xa0   :  { %1133 = vmatmul.msk.f32.gmra.mxu0 %vm192_vm1, %v109_v30 }
  0xa2   :  { %v162_v38 = vpop.f32.mrf.mxu1 }
  0xa6   :  { %v112_v31 = vpop.f32.mrf.mxu0 }
  0xa7   :  { %1102 = vmatmul.msk.f32.gmra.mxu2 %vm192_vm1, %v112_v31  ;;  %1118 = vmatmul.msk.f32.gmra.mxu3 %vm192_vm1, %v112_v31 }
  0xa8   :  { %1134 = vmatmul.msk.f32.gmra.mxu0 %vm192_vm1, %v112_v31 }
  0xaa   :  { %v165_v39 = vpop.f32.mrf.mxu1 }
  0xae   :  { %v115_v32 = vpop.f32.mrf.mxu0 }
  0xaf   :  { %1103 = vmatmul.msk.f32.gmra.mxu2 %vm192_vm1, %v115_v32  ;;  %1119 = vmatmul.msk.f32.gmra.mxu3 %vm192_vm1, %v115_v32 }
  0xb0   :  { %1135 = vmatmul.msk.f32.gmra.mxu0 %vm192_vm1, %v115_v32 }
  0xb2   :  { %v168_v40 = vpop.f32.mrf.mxu1 }
  0xb6   :  { %v118_v33 = vpop.f32.mrf.mxu0 }
  0xb7   :  { %1104 = vmatmul.msk.f32.gmra.mxu2 %vm192_vm1, %v118_v33  ;;  %1120 = vmatmul.msk.f32.gmra.mxu3 %vm192_vm1, %v118_v33 }
  0xb8   :  { %1136 = vmatmul.msk.f32.gmra.mxu0 %vm192_vm1, %v118_v33  ;;  %v1180_v33 = vpop.eup %1179 }
  0xb9   :  { %vm483_vm2 = vweird.f32 %v1180_v33 }
  0xba   :  { %v171_v41 = vpop.f32.mrf.mxu1 }
  0xbe   :  { %v121_v34 = vpop.f32.mrf.mxu0 }
  0xbf   :  { %1105 = vmatmul.msk.f32.gmra.mxu2 %vm192_vm1, %v121_v34  ;;  %1121 = vmatmul.msk.f32.gmra.mxu3 %vm192_vm1, %v121_v34 }
  0xc0   :  { %1137 = vmatmul.msk.f32.gmra.mxu0 %vm192_vm1, %v121_v34  ;;  %v479_v34 = vmul.f32 64.0, %v1180_v33 }
  0xc2   :  { %v174_v42 = vpop.f32.mrf.mxu1 }
  0xc6   :  { %v124_v36 = vpop.f32.mrf.mxu0 }
  0xc7   :  { %1106 = vmatmul.msk.f32.gmra.mxu2 %vm192_vm1, %v124_v36  ;;  %1122 = vmatmul.msk.f32.gmra.mxu3 %vm192_vm1, %v124_v36 }
  0xc8   :  { %1138 = vmatmul.msk.f32.gmra.mxu0 %vm192_vm1, %v124_v36 }
  0xca   :  { %v177_v43 = vpop.f32.mrf.mxu1 }
  0xcf   :  { %1107 = vmatmul.msk.f32.gmra.mxu2 %vm192_vm1, %v156_v35  ;;  %1123 = vmatmul.msk.f32.gmra.mxu3 %vm192_vm1, %v156_v35 }
  0xd0   :  { %1139 = vmatmul.msk.f32.gmra.mxu0 %vm192_vm1, %v156_v35 }
  0xd7   :  { %1108 = vmatmul.msk.f32.gmra.mxu2 %vm192_vm1, %v159_v37  ;;  %1124 = vmatmul.msk.f32.gmra.mxu3 %vm192_vm1, %v159_v37 }
  0xd8   :  { %1140 = vmatmul.msk.f32.gmra.mxu0 %vm192_vm1, %v159_v37 }
  0xdf   :  { %1109 = vmatmul.msk.f32.gmra.mxu2 %vm192_vm1, %v162_v38  ;;  %1125 = vmatmul.msk.f32.gmra.mxu3 %vm192_vm1, %v162_v38 }
  0xe0   :  { %1141 = vmatmul.msk.f32.gmra.mxu0 %vm192_vm1, %v162_v38 }
  0xe7   :  { %1110 = vmatmul.msk.f32.gmra.mxu2 %vm192_vm1, %v165_v39  ;;  %1126 = vmatmul.msk.f32.gmra.mxu3 %vm192_vm1, %v165_v39 }
  0xe8   :  { %1142 = vmatmul.msk.f32.gmra.mxu0 %vm192_vm1, %v165_v39 }
  0xef   :  { %1111 = vmatmul.msk.f32.gmra.mxu2 %vm192_vm1, %v168_v40  ;;  %1127 = vmatmul.msk.f32.gmra.mxu3 %vm192_vm1, %v168_v40 }
  0xf7   :  { %1112 = vmatmul.msk.f32.gmra.mxu2 %vm192_vm1, %v171_v41  ;;  %1128 = vmatmul.msk.f32.gmra.mxu3 %vm192_vm1, %v171_v41 }
  0xff   :  { %1113 = vmatmul.msk.f32.gmra.mxu2 %vm192_vm1, %v174_v42  ;;  %1129 = vmatmul.msk.f32.gmra.mxu3 %vm192_vm1, %v174_v42 }
 0x107   :  { %1114 = vmatmul.msk.f32.gmra.mxu2 %vm192_vm1, %v177_v43  ;;  %1130 = vmatmul.msk.f32.gmra.mxu3 %vm192_vm1, %v177_v43 }
 0x10d   :  { %v1447_v44 = vpop.f32.mrf.mxu0 }
 0x10e   :  { %v539_v48 = vsel %vm192_vm1, %v1447_v44, 0.0 }
 0x10f   :  { %1143 = vmatmul.msk.f32.vlgmr.msrb.gmra.mxu2 %vm192_vm1, %v168_v40 }
 0x112   :  { %v258_v45 = vpop.f32.mrf.mxu2  ;;  %v1450_v46 = vpop.f32.mrf.mxu3 }
 0x113   :  { %v436_v53 = vsel %vm192_vm1, %v258_v45, 0.0  ;;  %v491_v54 = vsel %vm192_vm1, %v1450_v46, 0.0 }
 0x115   :  { %v1452_v47 = vpop.f32.mrf.mxu0 }
 0x116   :  { %v540_v49 = vsel %vm192_vm1, %v1452_v47, 0.0 }
 0x117   :  { %v541_v50 = vadd.f32 %v540_v49, %v539_v48  ;;  %1144 = vmatmul.msk.f32.gmra.mxu2 %vm192_vm1, %v171_v41  ;;  %v480_v41 = vsub.f32 1.0, %v479_v34 }
 0x119   :  { %v481_v49 = vmul.f32 %v1180_v33, %v480_v41 }
 0x11a   :  { %v261_v51 = vpop.f32.mrf.mxu2  ;;  %v1459_v52 = vpop.f32.mrf.mxu3 }
 0x11b   :  { %v437_v55 = vsel %vm192_vm1, %v261_v51, 0.0  ;;  %v492_v56 = vsel %vm192_vm1, %v1459_v52, 0.0 }
 0x11c   :  { %v438_v57 = vadd.f32 %v437_v55, %v436_v53  ;;  %v493_v58 = vadd.f32 %v492_v56, %v491_v54 }
 0x11d   :  { %v1467_v59 = vpop.f32.mrf.mxu0 }
 0x11e   :  { %v542_v60 = vsel %vm192_vm1, %v1467_v59, 0.0 }
 0x11f   :  { %v543_v61 = vadd.f32 %v542_v60, %v541_v50  ;;  %1145 = vmatmul.msk.f32.gmra.mxu2 %vm192_vm1, %v174_v42  ;;  %v587_v50 = vld [vmem:[%s1971_s4] sm:$0xff]  ;;  %v1523_v60 = vld [vmem:[%s1973_s6 + $0x10] sm:$0xff] }
 0x120   :  { %661 = vmatpush.msrb.mxu1 %v1523_v60  ;;  %1170 = vmatpush.msrb.mxu3 %v1523_v60  ;;  %v595_v25 = vadd.f32 %v587_v50, %v1450_v46 }
 0x122   :  { %v264_v62 = vpop.f32.mrf.mxu2  ;;  %v1472_v63 = vpop.f32.mrf.mxu3 }
 0x123   :  { %v439_v0 = vsel %vm192_vm1, %v264_v62, 0.0  ;;  %v494_v1 = vsel %vm192_vm1, %v1472_v63, 0.0 }
 0x124   :  { %v440_v2 = vadd.f32 %v439_v0, %v438_v57  ;;  %v495_v3 = vadd.f32 %v494_v1, %v493_v58 }
 0x125   :  { %v1477_v4 = vpop.f32.mrf.mxu0 }
 0x126   :  { %v544_v5 = vsel %vm192_vm1, %v1477_v4, 0.0 }
 0x127   :  { %v1481_v6 = vadd.f32 %v544_v5, %v543_v61  ;;  %1146 = vmatmul.msk.f32.gmra.mxu2 %vm192_vm1, %v177_v43  ;;  %v482_v61 = vadd.f32 %v1180_v33, %v481_v49  ;;  %v1535_v5 = vld [vmem:[%s1970_s3 + $0x1] ss:$0 sm:$0xff] }
 0x12a   :  { %v267_v7 = vpop.f32.mrf.mxu2  ;;  %v1484_v8 = vpop.f32.mrf.mxu3 }
 0x12b   :  { %v441_v9 = vsel %vm192_vm1, %v267_v7, 0.0  ;;  %v496_v10 = vsel %vm192_vm1, %v1484_v8, 0.0  ;;  %v1537_v7 = vsel %vm483_vm2, %v1180_v33, %v482_v61 }
 0x12c   :  { %v442_v11 = vadd.f32 %v441_v9, %v440_v2  ;;  %v497_v12 = vadd.f32 %v496_v10, %v495_v3  ;;  %v1530_v2 = vld [vmem:[%s1970_s3] ss:$0 sm:$0xff]  ;;  %v588_v9 = vld [vmem:[%s1971_s4 + $0x8] sm:$0xff] }
 0x132   :  { %v270_v13 = vpop.f32.mrf.mxu2  ;;  %v1489_v14 = vpop.f32.mrf.mxu3 }
 0x133   :  { %v443_v15 = vsel %vm192_vm1, %v270_v13, 0.0  ;;  %v498_v16 = vsel %vm192_vm1, %v1489_v14, 0.0 }
 0x134   :  { %v444_v17 = vadd.f32 %v443_v15, %v442_v11  ;;  %v499_v18 = vadd.f32 %v498_v16, %v497_v12  ;;  %v589_v15 = vld [vmem:[%s1971_s4 + $0x10] sm:$0xff]  ;;  %v1550_v16 = vld [vmem:[%s1971_s4 + $0x18] sm:$0xff] }
 0x135   :  { %v598_v33 = vadd.f32 %v1550_v16, %v1484_v8 }
 0x13a   :  { %v273_v19 = vpop.f32.mrf.mxu2  ;;  %v1494_v20 = vpop.f32.mrf.mxu3 }
 0x13b   :  { %v445_v21 = vsel %vm192_vm1, %v273_v19, 0.0  ;;  %v500_v22 = vsel %vm192_vm1, %v1494_v20, 0.0  ;;  %v1562_v19 = vld [vmem:[%s1971_s4 + $0x20] sm:$0xff] }
 0x13c   :  { %v446_v23 = vadd.f32 %v445_v21, %v444_v17  ;;  %v501_v24 = vadd.f32 %v500_v22, %v499_v18  ;;  %v1555_v17 = vld [vmem:[%s1971_s4 + $0x38] sm:$0xff]  ;;  %v1567_v21 = vld [vmem:[%s1971_s4 + $0x28] sm:$0xff]  ;;  %v1572_v22 = vld [vmem:[%s1971_s4 + $0x30] sm:$0xff]  ;;  %v599_v34 = vadd.f32 %v1562_v19, %v1489_v14 }
 0x142   :  { %v276_v27 = vpop.f32.mrf.mxu2  ;;  %v341_v28 = vpop.f32.mrf.mxu3 }
 0x143   :  { %v447_v29 = vsel %vm192_vm1, %v276_v27, 0.0  ;;  %v502_v30 = vsel %vm192_vm1, %v341_v28, 0.0  ;;  %v596_v27 = vadd.f32 %v588_v9, %v1459_v52  ;;  %v601_v46 = vadd.f32 %v1572_v22, %v341_v28  ;;  %v636_v28 = vld [vmem:[%s1973_s6 + $0x8] sm:$0xff] }
 0x144   :  { %v448_v31 = vadd.f32 %v447_v29, %v446_v23  ;;  %v503_v32 = vadd.f32 %v502_v30, %v501_v24  ;;  %v597_v29 = vadd.f32 %v589_v15, %v1472_v63  ;;  %662 = vmatpush.msrb.mxu1 %v636_v28  ;;  %1171 = vmatpush.msrb.mxu3 %v636_v28 }
 0x14a   :  { %v279_v35 = vpop.f32.mrf.mxu2  ;;  %v344_v36 = vpop.f32.mrf.mxu3 }
 0x14b   :  { %v449_v37 = vsel %vm192_vm1, %v279_v35, 0.0  ;;  %v504_v38 = vsel %vm192_vm1, %v344_v36, 0.0  ;;  %v600_v35 = vadd.f32 %v1567_v21, %v1494_v20 }
 0x14c   :  { %v450_v39 = vadd.f32 %v449_v37, %v448_v31  ;;  %v505_v40 = vadd.f32 %v504_v38, %v503_v32  ;;  %v602_v31 = vadd.f32 %v1555_v17, %v344_v36 }
 0x14e   :  { %v451_v42 = vrot.slane %v450_v39, 4  ;;  %v506_v43 = vrot.slane %v505_v40, 4 }
 0x150   :  { %v452_v45 = vadd.f32 %v451_v42, %v450_v39  ;;  %v507_v48 = vadd.f32 %v506_v43, %v505_v40 }
 0x152   :  { %v453_v51 = vrot.slane %v452_v45, 2  ;;  %v508_v53 = vrot.slane %v507_v48, 2  ;;  %v1513_v54 = vpop.f32.mrf.mxu2  ;;  %v1515_v55 = vpop.f32.mrf.mxu3 }
 0x153   :  { %v1518_v56 = vadd.f32 %v587_v50, %v1515_v55 }
 0x154   :  { %v454_v57 = vadd.f32 %v453_v51, %v452_v45  ;;  %v509_v58 = vadd.f32 %v508_v53, %v507_v48 }
 0x156   :  { %v455_v62 = vrot.slane %v454_v57, 1  ;;  %v510_v0 = vrot.slane %v509_v58, 1 }
 0x158   :  { %v456_v1 = vadd.f32 %v455_v62, %v454_v57  ;;  %v511_v3 = vadd.f32 %v510_v0, %v509_v58  ;;  %v457_v57 = vsel %vm192_vm1, %v1513_v54, 0.0  ;;  %v512_v58 = vsel %vm192_vm1, %v1515_v55, 0.0 }
 0x15a   :  { %v485_v10 = vmul.f32 %v1537_v7, %v456_v1  ;;  %v533_v11 = vmul.f32 %v511_v3, %v1537_v7  ;;  %v285_v12 = vpop.f32.mrf.mxu2  ;;  %v350_v13 = vpop.f32.mrf.mxu3  ;;  %v635_v3 = vld [vmem:[%s1973_s6] sm:$0xff]  ;;  %s1064_s6 = sshll.u32 %s1244_s21, 4  ;;  %s1065_s6 = int_to_ptr.vmem [resolvable:$true] %s1064_s6 }
 0x15b   :  { %v1557_v18 = vadd.f32 %v588_v9, %v350_v13  ;;  %v458_v51 = vsel %vm192_vm1, %v285_v12, 0.0  ;;  %v513_v53 = vsel %vm192_vm1, %v350_v13, 0.0  ;;  %663 = vmatpush.msrb.mxu1 %v635_v3  ;;  %1172 = vmatpush.msrb.mxu3 %v635_v3 }
 0x15c   :  { %v489_v23 = vadd.f32 %v1530_v2, %v485_v10  ;;  %v537_v24 = vadd.f32 %v1535_v5, %v533_v11  ;;  %v459_v0 = vadd.f32 %v458_v51, %v457_v57  ;;  %v514_v1 = vadd.f32 %v513_v53, %v512_v58 }
 0x15d   :  { %746 = vmatpush.msra.mxu1 %v1502_v26 }
 0x15e   :  { %v668_v30 = vperm.slane %v489_v23, 0  ;;  %v1580_v32 = vmul.f32 %v537_v24, %v489_v23 }
 0x15f   :  { %747 = vmatpush.msra.mxu1 %v1523_v60 }
 0x160   :  { %v1589_v37 = vmul.f32 %v668_v30, %v602_v31  ;;  %v1591_v52 = vmul.f32 %v668_v30, %v595_v25  ;;  %v1593_v63 = vmul.f32 %v668_v30, %v596_v27  ;;  %v1595_v36 = vmul.f32 %v668_v30, %v597_v29 }
 0x161   :  { %v1597_v38 = vmul.f32 %v668_v30, %v598_v33  ;;  %v1599_v39 = vmul.f32 %v668_v30, %v599_v34  ;;  %v1601_v8 = vmul.f32 %v668_v30, %v600_v35  ;;  %v1603_v14 = vmul.f32 %v668_v30, %v601_v46  ;;  %748 = vmatpush.msra.mxu1 %v636_v28 }
 0x162   :  { %v288_v40 = vpop.f32.mrf.mxu2  ;;  %v353_v20 = vpop.f32.mrf.mxu3 }
 0x163   :  { %v1605_v41 = vadd.f32 %v589_v15, %v353_v20  ;;  %v460_v61 = vsel %vm192_vm1, %v288_v40, 0.0  ;;  %v515_v62 = vsel %vm192_vm1, %v353_v20, 0.0  ;;  %749 = vmatpush.msra.mxu1 %v635_v3 }
 0x164   :  { %v461_v54 = vadd.f32 %v460_v61, %v459_v0  ;;  %v516_v11 = vadd.f32 %v515_v62, %v514_v1 }
 0x16a   :  { %v291_v42 = vpop.f32.mrf.mxu2  ;;  %v356_v43 = vpop.f32.mrf.mxu3 }
 0x16b   :  { %v462_v9 = vsel %vm192_vm1, %v291_v42, 0.0  ;;  %v517_v10 = vsel %vm192_vm1, %v356_v43, 0.0 }
 0x16c   :  { %v463_v23 = vadd.f32 %v462_v9, %v461_v54  ;;  %v518_v24 = vadd.f32 %v517_v10, %v516_v11 }
 0x172   :  { %v294_v45 = vpop.f32.mrf.mxu2  ;;  %v1610_v48 = vpop.f32.mrf.mxu3 }
 0x173   :  { %v464_v13 = vsel %vm192_vm1, %v294_v45, 0.0  ;;  %v519_v15 = vsel %vm192_vm1, %v1610_v48, 0.0 }
 0x174   :  { %v465_v29 = vadd.f32 %v464_v13, %v463_v23  ;;  %v520_v30 = vadd.f32 %v519_v15, %v518_v24  ;;  %v606_v15 = vadd.f32 %v1550_v16, %v356_v43 }
 0x17a   :  { %v297_v49 = vpop.f32.mrf.mxu2  ;;  %v1612_v50 = vpop.f32.mrf.mxu3 }
 0x17b   :  { %v466_v25 = vsel %vm192_vm1, %v297_v49, 0.0  ;;  %v521_v27 = vsel %vm192_vm1, %v1612_v50, 0.0 }
 0x17c   :  { %v467_v33 = vadd.f32 %v466_v25, %v465_v29  ;;  %v522_v34 = vadd.f32 %v521_v27, %v520_v30 }
 0x182   :  { %v300_v12 = vpop.f32.mrf.mxu2  ;;  %v365_v55 = vpop.f32.mrf.mxu3 }
 0x183   :  { %v468_v31 = vsel %vm192_vm1, %v300_v12, 0.0  ;;  %v523_v26 = vsel %vm192_vm1, %v365_v55, 0.0 }
 0x184   :  { %v469_v35 = vadd.f32 %v468_v31, %v467_v33  ;;  %v524_v46 = vadd.f32 %v523_v26, %v522_v34 }
 0x18a   :  { %v303_v40 = vpop.f32.mrf.mxu2  ;;  %v368_v20 = vpop.f32.mrf.mxu3 }
 0x18b   :  { %v470_v60 = vsel %vm192_vm1, %v303_v40, 0.0  ;;  %v525_v42 = vsel %vm192_vm1, %v368_v20, 0.0 }
 0x18c   :  { %v471_v45 = vadd.f32 %v470_v60, %v469_v35  ;;  %v526_v49 = vadd.f32 %v525_v42, %v524_v46 }
 0x18e   :  { %v472_v51 = vrot.slane %v471_v45, 4  ;;  %v527_v53 = vrot.slane %v526_v49, 4 }
 0x190   :  { %v473_v28 = vadd.f32 %v472_v51, %v471_v45  ;;  %v528_v57 = vadd.f32 %v527_v53, %v526_v49 }
 0x192   :  { %v474_v58 = vrot.slane %v473_v28, 2  ;;  %v529_v61 = vrot.slane %v528_v57, 2  ;;  %v1714_v35 = vpop.f32.mrf.mxu2 }
 0x194   :  { %v475_v62 = vadd.f32 %v474_v58, %v473_v28  ;;  %v530_v0 = vadd.f32 %v529_v61, %v528_v57 }
 0x196   :  { %v476_v1 = vrot.slane %v475_v62, 1  ;;  %v531_v3 = vrot.slane %v530_v0, 1 }
 0x198   :  { %v477_v9 = vadd.f32 %v476_v1, %v475_v62  ;;  %v532_v10 = vadd.f32 %v531_v3, %v530_v0 }
 0x19a   :  { %v486_v54 = vmul.f32 %v1537_v7, %v477_v9  ;;  %v534_v11 = vmul.f32 %v532_v10, %v1537_v7  ;;  %v1734_v9 = vpop.f32.mrf.mxu2 }
 0x19c   :  { %v490_v12 = vadd.f32 %v1530_v2, %v486_v54  ;;  %v538_v13 = vadd.f32 %v1535_v5, %v534_v11  ;;  %v607_v5 = vadd.f32 %v1562_v19, %v1610_v48  ;;  %v610_v19 = vadd.f32 %v1555_v17, %v368_v20 }
 0x19e   :  { %v669_v23 = vperm.slane %v490_v12, 0  ;;  %v640_v24 = vmul.f32 %v538_v13, %v490_v12 }
 0x1a0   :  { %v681_v25 = vmul.f32 %v669_v23, %v606_v15  ;;  %v643_v27 = vrot.slane %v640_v24, 7  ;;  %v678_v29 = vmul.f32 %v669_v23, %v1518_v56  ;;  %v679_v30 = vmul.f32 %v669_v23, %v1557_v18 }
 0x1a1   :  { %v680_v2 = vmul.f32 %v669_v23, %v1605_v41  ;;  %v682_v16 = vmul.f32 %v669_v23, %v607_v5  ;;  %v608_v56 = vadd.f32 %v1567_v21, %v1612_v50  ;;  %v1763_v5 = vld [vmem:[%s1972_s5 + $0x10] sm:$0xff] }
 0x1a2   :  { %1159 = vmatmul.msk.f32.vlgmr.msrb.gmra.mxu3 %vm192_vm1, %v681_v25  ;;  %v645_v31 = vsel %vm644_vm3, %v643_v27, %v1580_v32  ;;  %v609_v32 = vadd.f32 %v1572_v22, %v365_v55  ;;  %v1684_v22 = vpop.f32.mrf.mxu0  ;;  %v1747_v25 = vld [vmem:[%s1972_s5] sm:$0xff]  ;;  %v1752_v27 = vld [vmem:[%s1972_s5 + $0x8] sm:$0xff] }
 0x1a3   :  { %1147 = vmatmul.msk.f32.vlgmr.msrb.gmra.mxu1 %vm192_vm1, %v645_v31  ;;  %v683_v18 = vmul.f32 %v669_v23, %v608_v56  ;;  %v1765_v56 = vpop.f32.mrf.mxu2 }
 0x1a4   :  { %v684_v41 = vmul.f32 %v669_v23, %v609_v32  ;;  %v546_v32 = vsel %vm192_vm1, %v1684_v22, 0.0 }
 0x1aa   :  { %1160 = vmatmul.msk.f32.gmra.mxu3 %vm192_vm1, %v682_v16 }
 0x1ab   :  { %1148 = vmatmul.msk.f32.vlgmr.msra.gmra.mxu1 %vm192_vm1, %v1591_v52  ;;  %v685_v52 = vmul.f32 %v669_v23, %v610_v19 }
 0x1b2   :  { %1161 = vmatmul.msk.f32.gmra.mxu3 %vm192_vm1, %v683_v18 }
 0x1b3   :  { %1149 = vmatmul.msk.f32.gmra.mxu1 %vm192_vm1, %v1593_v63 }
 0x1ba   :  { %1162 = vmatmul.msk.f32.gmra.mxu3 %vm192_vm1, %v684_v41 }
 0x1bb   :  { %1150 = vmatmul.msk.f32.gmra.mxu1 %vm192_vm1, %v1595_v36  ;;  %v1688_v36 = vpop.f32.mrf.mxu0 }
 0x1c2   :  { %1163 = vmatmul.msk.f32.gmra.mxu3 %vm192_vm1, %v685_v52 }
 0x1c3   :  { %1151 = vmatmul.msk.f32.gmra.mxu1 %vm192_vm1, %v1597_v38 }
 0x1cb   :  { %1152 = vmatmul.msk.f32.gmra.mxu1 %vm192_vm1, %v1599_v39  ;;  %v1692_v39 = vpop.f32.mrf.mxu0 }
 0x1d3   :  { %1153 = vmatmul.msk.f32.gmra.mxu1 %vm192_vm1, %v1601_v8  ;;  %v1696_v8 = vpop.f32.mrf.mxu0 }
 0x1db   :  { %1154 = vmatmul.msk.f32.gmra.mxu1 %vm192_vm1, %v1603_v14  ;;  %v1702_v48 = vpop.f32.mrf.mxu0 }
 0x1e3   :  { %1155 = vmatmul.msk.f32.gmra.mxu1 %vm192_vm1, %v1589_v37  ;;  %v1708_v26 = vpop.f32.mrf.mxu0 }
 0x1e4   :  { %v561_v15 = vsel %vm192_vm1, %v1708_v26, 0.0 }
 0x1eb   :  { %1156 = vmatmul.msk.f32.gmra.mxu1 %vm192_vm1, %v678_v29  ;;  %v1732_v1 = vpop.f32.mrf.mxu0  ;;  %v560_v29 = vsel %vm192_vm1, %v1702_v48, 0.0 }
 0x1ec   :  { %v562_v16 = vadd.f32 %v561_v15, %v560_v29 }
 0x1f3   :  { %1157 = vmatmul.msk.f32.gmra.mxu1 %vm192_vm1, %v679_v30  ;;  %v1742_v24 = vpop.f32.mrf.mxu0  ;;  %v563_v30 = vsel %vm192_vm1, %v1732_v1, 0.0 }
 0x1f4   :  { %v565_v41 = vsel %vm192_vm1, %v1742_v24, 0.0 }
 0x1fb   :  { %1158 = vmatmul.msk.f32.gmra.mxu1 %vm192_vm1, %v680_v2 }
 0x220   :  { %v1680_v17 = vpop.f32.mrf.mxu1 }
 0x225   :  { %v1704_v50 = vpop.f32.mrf.mxu3 }
 0x228   :  { %v1682_v21 = vpop.f32.mrf.mxu1 }
 0x229   :  { %v799_v46 = vsel %vm192_vm1, %v1682_v21, -inf }
 0x22d   :  { %v1718_v40 = vpop.f32.mrf.mxu3 }
 0x230   :  { %v1686_v63 = vpop.f32.mrf.mxu1 }
 0x231   :  { %v800_v20 = vsel %vm192_vm1, %v1686_v63, -inf }
 0x235   :  { %v1736_v10 = vpop.f32.mrf.mxu3 }
 0x238   :  { %v1690_v38 = vpop.f32.mrf.mxu1 }
 0x239   :  { %v801_v33 = vsel %vm192_vm1, %v1690_v38, -inf }
 0x23a   :  { %v802_v45 = vmax.f32 %v799_v46, %v801_v33  ;;  %v1780_v33 = vadd.f32 %v1747_v25, %v1447_v44  ;;  %v564_v46 = vadd.f32 %v563_v30, %v562_v16  ;;  %v547_v44 = vadd.f32 %v546_v32, %v1481_v6 }
 0x23b   :  { %v550_v32 = vsel %vm192_vm1, %v1692_v39, 0.0 }
 0x23d   :  { %v1767_v18 = vpop.f32.mrf.mxu3 }
 0x240   :  { %v1694_v37 = vpop.f32.mrf.mxu1 }
 0x241   :  { %v803_v34 = vsel %vm192_vm1, %v1694_v37, -inf }
 0x242   :  { %v804_v49 = vmax.f32 %v800_v20, %v803_v34  ;;  %v1784_v34 = vadd.f32 %v1752_v27, %v1452_v47  ;;  %v1788_v20 = vadd.f32 %v1763_v5, %v1467_v59  ;;  %v567_v47 = vsel %vm192_vm1, %v1714_v35, 0.0 }
 0x245   :  { %v1817_v29 = vpop.f32.mrf.mxu3 }
 0x248   :  { %v1698_v14 = vpop.f32.mrf.mxu1 }
 0x249   :  { %v805_v60 = vsel %vm192_vm1, %v1698_v14, -inf }
 0x24a   :  { %v806_v53 = vmax.f32 %v802_v45, %v805_v60  ;;  %v548_v60 = vsel %vm192_vm1, %v1688_v36, 0.0 }
 0x250   :  { %v1700_v43 = vpop.f32.mrf.mxu1 }
 0x251   :  { %v807_v42 = vsel %vm192_vm1, %v1700_v43, -inf }
 0x252   :  { %v808_v28 = vmax.f32 %v804_v49, %v807_v42  ;;  %v824_v42 = vsel %vm192_vm1, %v1704_v50, -inf  ;;  %v566_v49 = vadd.f32 %v565_v41, %v564_v46  ;;  %v1827_v46 = vld [vmem:[%s1972_s5 + $0x20] sm:$0xff] }
 0x258   :  { %v1706_v55 = vpop.f32.mrf.mxu1 }
 0x259   :  { %v809_v51 = vsel %vm192_vm1, %v1706_v55, -inf }
 0x25a   :  { %v810_v61 = vmax.f32 %v806_v53, %v809_v51 }
 0x260   :  { %v1728_v57 = vpop.f32.mrf.mxu1 }
 0x261   :  { %v811_v58 = vsel %vm192_vm1, %v1728_v57, -inf }
 0x262   :  { %v812_v62 = vmax.f32 %v808_v28, %v811_v58 }
 0x264   :  { %v813_v0 = vmax.f32 %v810_v61, %v812_v62  ;;  %v549_v61 = vadd.f32 %v548_v60, %v547_v44  ;;  %v571_v60 = vsel %vm192_vm1, %v1765_v56, 0.0 }
 0x266   :  { %v814_v3 = vrot.slane %v813_v0, 4 }
 0x268   :  { %v815_v54 = vmax.f32 %v813_v0, %v814_v3  ;;  %v1738_v11 = vpop.f32.mrf.mxu1  ;;  %v568_v3 = vadd.f32 %v567_v47, %v566_v49  ;;  %v830_v49 = vsel %vm192_vm1, %v1767_v18, -inf  ;;  %v832_v47 = vsel %vm192_vm1, %v1817_v29, -inf }
 0x26a   :  { %v816_v12 = vrot.slane %v815_v54, 2 }
 0x26c   :  { %v817_v13 = vmax.f32 %v815_v54, %v816_v12 }
 0x26e   :  { %v818_v23 = vrot.slane %v817_v13, 1 }
 0x270   :  { %v819_v31 = vmax.f32 %v817_v13, %v818_v23  ;;  %v1758_v2 = vpop.f32.mrf.mxu1  ;;  %v1815_v23 = vpop.f32.mrf.mxu2 }
 0x271   :  { %v821_v52 = vsel %vm192_vm1, %v1758_v2, -inf  ;;  %v573_v44 = vsel %vm192_vm1, %v1815_v23, 0.0 }
 0x272   :  { %v1774_v19 = vmax.f32 %v819_v31, %v1680_v17  ;;  %v825_v51 = vmax.f32 %v821_v52, %v824_v42  ;;  %v826_v52 = vsel %vm192_vm1, %v1718_v40, -inf }
 0x274   :  { %v855_v45 = vperm.slane %v1774_v19, 0 }
 0x276   :  { %v857_v53 = vsub.f32 %v1682_v21, %v855_v45  ;;  %v858_v59 = vsub.f32 %v1686_v63, %v855_v45  ;;  %v859_v28 = vsub.f32 %v1690_v38, %v855_v45  ;;  %v860_v58 = vsub.f32 %v1694_v37, %v855_v45 }
 0x277   :  { %v861_v62 = vsub.f32 %v1698_v14, %v855_v45  ;;  %v862_v0 = vsub.f32 %v1700_v43, %v855_v45  ;;  %v863_v6 = vsub.f32 %v1706_v55, %v855_v45  ;;  %v569_v21 = vsel %vm192_vm1, %v1734_v9, 0.0 }
 0x278   :  { %v873_v54 = vmul.f32 1.442695, %v857_v53  ;;  %v875_v12 = vmul.f32 1.442695, %v858_v59  ;;  %v877_v13 = vmul.f32 1.442695, %v859_v28  ;;  %v1805_v15 = vpop.f32.mrf.mxu1  ;;  %v864_v30 = vsub.f32 %v1728_v57, %v855_v45 }
 0x279   :  { %v828_v63 = vsel %vm192_vm1, %v1736_v10, -inf  ;;  %v879_v38 = vmul.f32 1.442695, %v860_v58  ;;  %v820_v37 = vsel %vm192_vm1, %v1738_v11, -inf  ;;  %v881_v14 = vmul.f32 1.442695, %v861_v62 }
 0x27a   :  { %1181 = vpow2.f32 %v873_v54  ;;  %v829_v43 = vmax.f32 %v825_v51, %v828_v63  ;;  %v822_v55 = vsel %vm192_vm1, %v1805_v15, -inf  ;;  %v883_v31 = vmul.f32 1.442695, %v862_v0  ;;  %v1832_v57 = vld [vmem:[%s1972_s5 + $0x18] sm:$0xff]  ;;  %v1849_v54 = vld [vmem:[%s1972_s5 + $0x28] sm:$0xff] }
 0x27b   :  { %1183 = vpow2.f32 %v875_v12  ;;  %v823_v16 = vmax.f32 %v820_v37, %v822_v55  ;;  %v570_v41 = vadd.f32 %v569_v21, %v568_v3  ;;  %v885_v42 = vmul.f32 1.442695, %v863_v6 }
 0x27c   :  { %1185 = vpow2.f32 %v877_v13  ;;  %v887_v51 = vmul.f32 1.442695, %v864_v30  ;;  %v833_v53 = vmax.f32 %v829_v43, %v832_v47  ;;  %v623_v58 = vadd.f32 %v1827_v46, %v1684_v22 }
 0x27d   :  { %1187 = vpow2.f32 %v879_v38  ;;  %v827_v45 = vmax.f32 %v823_v16, %v826_v52  ;;  %v551_v62 = vadd.f32 %v550_v32, %v549_v61  ;;  %v622_v0 = vadd.f32 %v1832_v57, %v1477_v4 }
 0x27e   :  { %1189 = vpow2.f32 %v881_v14  ;;  %v572_v6 = vadd.f32 %v571_v60, %v570_v41  ;;  %v552_v22 = vsel %vm192_vm1, %v1696_v8, 0.0 }
 0x27f   :  { %1191 = vpow2.f32 %v883_v31  ;;  %v831_v59 = vmax.f32 %v827_v45, %v830_v49  ;;  %v1864_v31 = vld [vmem:[%s1972_s5 + $0x30] sm:$0xff]  ;;  %v553_v52 = vadd.f32 %v552_v22, %v551_v62 }
 0x280   :  { %v1182_v28 = vpop.eup %1181  ;;  %1193 = vpow2.f32 %v885_v42  ;;  %v574_v61 = vadd.f32 %v573_v44, %v572_v6 }
 0x281   :  { %v1184_v3 = vpop.eup %1183  ;;  %v905_v12 = vsel %vm192_vm1, %v1182_v28, 0.0  ;;  %v958_v13 = vmul.f32 %v1182_v28, %v1780_v33  ;;  %v834_v21 = vmax.f32 %v831_v59, %v833_v53  ;;  %1195 = vpow2.f32 %v887_v51 }
 0x282   :  { %v1186_v63 = vpop.eup %1185  ;;  %v906_v4 = vsel %vm192_vm1, %v1184_v3, 0.0  ;;  %v959_v38 = vmul.f32 %v1184_v3, %v1784_v34  ;;  %v624_v33 = vadd.f32 %v1849_v54, %v1688_v36  ;;  %v575_v45 = vrot.slane %v574_v61, 4 }
 0x283   :  { %v1188_v37 = vpop.eup %1187  ;;  %v907_v14 = vadd.f32 %v906_v4, %v905_v12  ;;  %v960_v43 = vmul.f32 %v1186_v63, %v1788_v20  ;;  %v974_v55 = vsel %vm192_vm1, %v958_v13, 0.0  ;;  %v908_v16 = vsel %vm192_vm1, %v1186_v63, 0.0  ;;  %v1871_v20 = vld [vmem:[%s1972_s5 + $0x38] sm:$0xff] }
 0x284   :  { %v1190_v30 = vpop.eup %1189  ;;  %v961_v32 = vmul.f32 %v1188_v37, %v622_v0  ;;  %v975_v34 = vsel %vm192_vm1, %v959_v38, 0.0  ;;  %v835_v36 = vrot.slane %v834_v21, 4  ;;  %v910_v44 = vsel %vm192_vm1, %v1188_v37, 0.0 }
 0x285   :  { %v1192_v41 = vpop.eup %1191  ;;  %v909_v60 = vadd.f32 %v908_v16, %v907_v14  ;;  %v976_v42 = vadd.f32 %v975_v34, %v974_v55  ;;  %v962_v49 = vmul.f32 %v1190_v30, %v623_v58  ;;  %v977_v47 = vsel %vm192_vm1, %v960_v43, 0.0 }
 0x286   :  { %v1194_v51 = vpop.eup %1193  ;;  %v625_v53 = vadd.f32 %v1864_v31, %v1692_v39  ;;  %v626_v62 = vadd.f32 %v1871_v20, %v1696_v8  ;;  %v912_v0 = vsel %vm192_vm1, %v1190_v30, 0.0  ;;  %v963_v6 = vmul.f32 %v1192_v41, %v624_v33 }
 0x287   :  { %v911_v59 = vadd.f32 %v910_v44, %v909_v60  ;;  %v978_v28 = vadd.f32 %v977_v47, %v976_v42  ;;  %v979_v3 = vsel %vm192_vm1, %v961_v32, 0.0  ;;  %v1196_v12 = vpop.eup %1195  ;;  %v554_v13 = vrot.slane %v553_v52, 4 }
 0x288   :  { %v836_v22 = vmax.f32 %v834_v21, %v835_v36  ;;  %v576_v4 = vadd.f32 %v575_v45, %v574_v61  ;;  %v914_v38 = vsel %vm192_vm1, %v1192_v41, 0.0  ;;  %v964_v37 = vmul.f32 %v1194_v51, %v625_v53 }
 0x289   :  { %v913_v63 = vadd.f32 %v912_v0, %v911_v59  ;;  %v980_v58 = vadd.f32 %v979_v3, %v978_v28  ;;  %v981_v39 = vsel %vm192_vm1, %v962_v49, 0.0  ;;  %v916_v8 = vsel %vm192_vm1, %v1194_v51, 0.0 }
 0x28a   :  { %v837_v55 = vrot.slane %v836_v22, 2  ;;  %v965_v30 = vmul.f32 %v1196_v12, %v626_v62  ;;  %v983_v33 = vsel %vm192_vm1, %v963_v6, 0.0  ;;  %v555_v60 = vadd.f32 %v554_v13, %v553_v52 }
 0x28b   :  { %v915_v14 = vadd.f32 %v914_v38, %v913_v63  ;;  %v982_v43 = vadd.f32 %v981_v39, %v980_v58  ;;  %v577_v42 = vrot.slane %v576_v4, 2  ;;  %v918_v21 = vsel %vm192_vm1, %v1196_v12, 0.0 }
 0x28c   :  { %v838_v34 = vmax.f32 %v836_v22, %v837_v55  ;;  %v985_v61 = vsel %vm192_vm1, %v964_v37, 0.0  ;;  %v987_v44 = vsel %vm192_vm1, %v965_v30, 0.0  ;;  %v842_v49 = vrot.slane %v1680_v17, 1 }
 0x28d   :  { %v917_v16 = vadd.f32 %v916_v8, %v915_v14  ;;  %v984_v32 = vadd.f32 %v983_v33, %v982_v43  ;;  %v556_v53 = vrot.slane %v555_v60, 2  ;;  %v578_v59 = vadd.f32 %v577_v42, %v576_v4  ;;  %v1175_v33 = vld [vmem:[%s1970_s3 + $0x2] ss:$0 sm:$0xff] }
 0x28e   :  { %v839_v45 = vrot.slane %v838_v34, 1 }
 0x28f   :  { %v1887_v41 = vadd.f32 %v918_v21, %v917_v16  ;;  %v986_v36 = vadd.f32 %v985_v61, %v984_v32  ;;  %v557_v0 = vadd.f32 %v556_v53, %v555_v60  ;;  %v579_v6 = vrot.slane %v578_v59, 1 }
 0x290   :  { %v840_v51 = vmax.f32 %v838_v34, %v839_v45  ;;  %v627_v32 = vadd.f32 %v1747_v25, %v1702_v48  ;;  %v628_v21 = vadd.f32 %v1752_v27, %v1708_v26  ;;  %v629_v61 = vadd.f32 %v1763_v5, %v1732_v1 }
 0x291   :  { %v1891_v47 = vadd.f32 %v987_v44, %v986_v36  ;;  %v558_v38 = vrot.slane %v557_v0, 1  ;;  %v580_v37 = vadd.f32 %v579_v6, %v578_v59  ;;  %v630_v44 = vadd.f32 %v1832_v57, %v1742_v24 }
 0x292   :  { %v846_v28 = vmax.f32 %v840_v51, %v842_v49  ;;  %v632_v6 = vadd.f32 %v1849_v54, %v1734_v9 }
 0x293   :  { %v559_v8 = vadd.f32 %v558_v38, %v557_v0  ;;  %v582_v30 = vmul.f32 %v580_v37, %v1537_v7 }
 0x294   :  { %v849_v52 = vrot.slane %v846_v28, 7  ;;  %v856_v62 = vperm.slane %v846_v28, 0 }
 0x295   :  { %v581_v42 = vmul.f32 %v559_v8, %v1537_v7  ;;  %v586_v36 = vadd.f32 %v1175_v33, %v582_v30  ;;  %v631_v7 = vadd.f32 %v1827_v46, %v1714_v35 }
 0x296   :  { %v865_v3 = vsub.f32 %v1738_v11, %v856_v62  ;;  %v866_v12 = vsub.f32 %v1758_v2, %v856_v62  ;;  %v867_v13 = vsub.f32 %v1805_v15, %v856_v62  ;;  %v868_v63 = vsub.f32 %v1704_v50, %v856_v62  ;;  %v1029_v2 = vld [vmem:[%s1974_s7 + $0x18] sm:$0xff]  ;;  %v1028_v15 = vld [vmem:[%s1974_s7 + $0x10] sm:$0xff] }
 0x297   :  { %v850_v58 = vsel %vm644_vm3, %v849_v52, %v1774_v19  ;;  %v869_v22 = vsub.f32 %v1718_v40, %v856_v62  ;;  %v870_v4 = vsub.f32 %v1736_v10, %v856_v62  ;;  %v871_v43 = vsub.f32 %v1767_v18, %v856_v62  ;;  %1049 = vmatpush.msra.mxu2 %v1029_v2  ;;  %v1027_v18 = vld [vmem:[%s1974_s7 + $0x8] sm:$0xff] }
 0x298   :  { %v889_v39 = vmul.f32 1.442695, %v865_v3  ;;  %v891_v14 = vmul.f32 1.442695, %v866_v12  ;;  %v893_v11 = vmul.f32 1.442695, %v867_v13  ;;  %v852_v50 = vsub.f32 %v1680_v17, %v850_v58 }
 0x299   :  { %v895_v55 = vmul.f32 1.442695, %v868_v63  ;;  %v897_v19 = vmul.f32 1.442695, %v869_v22  ;;  %v872_v40 = vsub.f32 %v1817_v29, %v856_v62  ;;  %v899_v10 = vmul.f32 1.442695, %v870_v4  ;;  %1050 = vmatpush.msra.mxu2 %v1028_v15 }
 0x29a   :  { %1197 = vpow2.f32 %v889_v39  ;;  %v901_v17 = vmul.f32 1.442695, %v871_v43  ;;  %v1026_v29 = vld [vmem:[%s1974_s7] sm:$0xff]  ;;  %v853_v16 = vmul.f32 1.442695, %v852_v50  ;;  %v954_v24 = vrot.slane %v586_v36, 7 }
 0x29b   :  { %1199 = vpow2.f32 %v891_v14  ;;  %1051 = vmatpush.msra.mxu2 %v1027_v18  ;;  %v903_v34 = vmul.f32 1.442695, %v872_v40  ;;  %v585_v0 = vadd.f32 %v1175_v33, %v581_v42  ;;  %v633_v58 = vadd.f32 %v1864_v31, %v1765_v56 }
 0x29c   :  { %1201 = vpow2.f32 %v893_v11  ;;  %v920_v22 = vrot.slane %v1887_v41, 4  ;;  %v989_v11 = vrot.slane %v1891_v47, 4  ;;  %v634_v56 = vadd.f32 %v1871_v20, %v1815_v23 }
 0x29d   :  { %1203 = vpow2.f32 %v895_v55  ;;  %1052 = vmatpush.msra.mxu2 %v1026_v29  ;;  %v955_v9 = vsel %vm644_vm3, %v954_v24, %v585_v0 }
 0x29e   :  { %1205 = vpow2.f32 %v897_v19  ;;  %v990_v29 = vadd.f32 %v989_v11, %v1891_v47 }
 0x29f   :  { %1207 = vpow2.f32 %v899_v10  ;;  %v921_v10 = vadd.f32 %v920_v22, %v1887_v41 }
 0x2a0   :  { %v1198_v60 = vpop.eup %1197  ;;  %1209 = vpow2.f32 %v901_v17  ;;  %v991_v42 = vrot.slane %v990_v29, 2 }
 0x2a1   :  { %v1200_v45 = vpop.eup %1199  ;;  %v926_v48 = vsel %vm192_vm1, %v1198_v60, 0.0  ;;  %v966_v25 = vmul.f32 %v1198_v60, %v627_v32  ;;  %1211 = vpow2.f32 %v853_v16  ;;  %v922_v32 = vrot.slane %v921_v10, 2 }
 0x2a2   :  { %v1202_v49 = vpop.eup %1201  ;;  %v927_v51 = vsel %vm192_vm1, %v1200_v45, 0.0  ;;  %v967_v26 = vmul.f32 %v1200_v45, %v628_v21  ;;  %1213 = vpow2.f32 %v903_v34 }
 0x2a3   :  { %v1204_v27 = vpop.eup %1203  ;;  %v928_v1 = vadd.f32 %v927_v51, %v926_v48  ;;  %v968_v5 = vmul.f32 %v1202_v49, %v629_v61  ;;  %v995_v53 = vsel %vm192_vm1, %v966_v25, 0.0  ;;  %v929_v57 = vsel %vm192_vm1, %v1202_v49, 0.0 }
 0x2a4   :  { %v1206_v59 = vpop.eup %1205  ;;  %v969_v28 = vmul.f32 %v1204_v27, %v630_v44  ;;  %v996_v52 = vsel %vm192_vm1, %v967_v26, 0.0  ;;  %v931_v3 = vsel %vm192_vm1, %v1204_v27, 0.0  ;;  %v923_v36 = vadd.f32 %v922_v32, %v921_v10 }
 0x2a5   :  { %v1208_v62 = vpop.eup %1207  ;;  %v930_v35 = vadd.f32 %v929_v57, %v928_v1  ;;  %v997_v46 = vadd.f32 %v996_v52, %v995_v53  ;;  %v970_v12 = vmul.f32 %v1206_v59, %v631_v7  ;;  %v998_v13 = vsel %vm192_vm1, %v968_v5, 0.0 }
 0x2a6   :  { %v1210_v63 = vpop.eup %1209  ;;  %v933_v39 = vsel %vm192_vm1, %v1206_v59, 0.0  ;;  %v971_v14 = vmul.f32 %v1208_v62, %v632_v6  ;;  %v1000_v43 = vsel %vm192_vm1, %v969_v28, 0.0  ;;  %v935_v31 = vsel %vm192_vm1, %v1208_v62, 0.0 }
 0x2a7   :  { %v932_v4 = vadd.f32 %v931_v3, %v930_v35  ;;  %v999_v38 = vadd.f32 %v998_v13, %v997_v46  ;;  %v1212_v37 = vpop.eup %1211  ;;  %v972_v19 = vmul.f32 %v1210_v63, %v633_v58  ;;  %v1002_v40 = vsel %vm192_vm1, %v970_v12, 0.0  ;;  %v1178_v13 = vld [vmem:[%s1975_s8] ss:$0 sm:$0xff] }
 0x2a8   :  { %v1214_v54 = vpop.eup %1213  ;;  %v957_v50 = vmul.f32 %v1212_v37, %v955_v9  ;;  %v937_v8 = vsel %vm192_vm1, %v1210_v63, 0.0  ;;  %v1004_v17 = vsel %vm192_vm1, %v971_v14, 0.0  ;;  %v992_v48 = vadd.f32 %v991_v42, %v990_v29 }
 0x2a9   :  { %v934_v55 = vadd.f32 %v933_v39, %v932_v4  ;;  %v1001_v2 = vadd.f32 %v1000_v43, %v999_v38  ;;  %v973_v30 = vmul.f32 %v1214_v54, %v634_v56  ;;  %v939_v23 = vsel %vm192_vm1, %v1214_v54, 0.0 }
 0x2aa   :  { %v1006_v20 = vsel %vm192_vm1, %v972_v19, 0.0  ;;  %v924_v49 = vrot.slane %v923_v36, 1  ;;  %v993_v26 = vrot.slane %v992_v48, 1 }
 0x2ab   :  { %v936_v15 = vadd.f32 %v935_v31, %v934_v55  ;;  %v1003_v18 = vadd.f32 %v1002_v40, %v1001_v2  ;;  %v1008_v41 = vsel %vm192_vm1, %v973_v30, 0.0 }
 0x2ac   :  { %v925_v5 = vadd.f32 %v924_v49, %v923_v36  ;;  %v994_v24 = vadd.f32 %v993_v26, %v992_v48 }
 0x2ad   :  { %v938_v33 = vadd.f32 %v937_v8, %v936_v15  ;;  %v1005_v16 = vadd.f32 %v1004_v17, %v1003_v18 }
 0x2af   :  { %v940_v34 = vadd.f32 %v939_v23, %v938_v33  ;;  %v1007_v60 = vadd.f32 %v1006_v20, %v1005_v16 }
 0x2b1   :  { %v941_v21 = vrot.slane %v940_v34, 4  ;;  %v1009_v61 = vadd.f32 %v1008_v41, %v1007_v60 }
 0x2b3   :  { %v942_v45 = vadd.f32 %v941_v21, %v940_v34  ;;  %v1010_v44 = vrot.slane %v1009_v61, 4 }
 0x2b5   :  { %v943_v25 = vrot.slane %v942_v45, 2  ;;  %v1011_v47 = vadd.f32 %v1010_v44, %v1009_v61 }
 0x2b7   :  { %v944_v7 = vadd.f32 %v943_v25, %v942_v45  ;;  %v1012_v51 = vrot.slane %v1011_v47, 2 }
 0x2b9   :  { %v945_v27 = vrot.slane %v944_v7, 1  ;;  %v1013_v1 = vadd.f32 %v1012_v51, %v1011_v47 }
 0x2bb   :  { %v946_v53 = vadd.f32 %v945_v27, %v944_v7  ;;  %v1014_v59 = vrot.slane %v1013_v1, 1 }
 0x2bd   :  { %v949_v57 = vsel %vm644_vm3, %v946_v53, %v925_v5  ;;  %v1015_v28 = vadd.f32 %v1014_v59, %v1013_v1 }
 0x2be   :  { %v951_v52 = vadd.f32 %v1212_v37, %v949_v57 }
 0x2bf   :  { %v1018_v62 = vsel %vm644_vm3, %v1015_v28, %v994_v24 }
 0x2c0   :  { %v1020_v0 = vadd.f32 %v1018_v62, %v957_v50  ;;  %1215 = vrcp.f32 %v951_v52 }
 0x2c6   :  { %v1216_v35 = vpop.eup %1215 }
 0x2c7   :  { %v1022_v46 = vmul.f32 %v1216_v35, %v951_v52 }
 0x2c9   :  { %v1023_v6 = vsub.f32 2.0, %v1022_v46 }
 0x2cb   :  { %v1024_v3 = vmul.f32 %v1216_v35, %v1023_v6 }
 0x2cd   :  { %v1025_v12 = vmul.f32 %v1024_v3, %v1020_v0 }
 0x2cf   :  { %1164 = vmatmul.msk.f32.vlgmr.msra.gmra.mxu2 %vm192_vm1, %v1025_v12 }
 0x352   :  { %v1054_v63 = vpop.f32.mrf.mxu2 }
 0x353   :  { %v1055_v58 = vadd.f32 %v1178_v13, %v1054_v63 }
 0x355   :  { %1058 = vst.msk [vmem:[#allocation2] sm:$0x3] %vm1057_vm4, %v1055_v58 }
 0x356   :  { %1069 = dma.vmem_to_hbm [thread:$0]  %s1065_s6, 32, %s1067_s24, [#allocation3]  }
 0x357   :  { %1241 = dma.done.wait [#allocation3], 32  }
 0x358   :  { %1242 = vsyncadd [#allocation3], 4294967264 }
 0x359   :  { %1074 = vsyncpa [#allocation3], 1 }

</bundles_post_ra>
